<compile_context>
chip_gen: v7x
topology: tpu7x:2x2x1
jax: 0.10.0
libtpu: 0.0.40
codegen_flags: <defaults>
</compile_context>

<pallas_src>
import numpy as np
import jax
import jax.numpy as jnp
from jax.experimental import pallas as pl
from jax.experimental.pallas import tpu as pltpu


def _mlp_kernel(x_ref, w1a_ref, b1_ref, w2_ref, b2_ref, w3_ref, b3_ref,
                w4_ref, b4_ref, o_ref):
    x = x_ref[...]                                                   # (9, t) raw pixels, f32

    # Fused layer-1 + linear part: w1a = [w1^T * (1/255) ; padded C^T]  -> (68, 9)
    h_all = jnp.dot(w1a_ref[...], x, preferred_element_type=jnp.float32)   # (68, t)
    lin = h_all[64:68, :]                                            # (4, t) linear part
    h = jnp.maximum(h_all[0:64, :] + b1_ref[...], 0.0)               # (64, t) f32

    # Dominant layers: bf16 inputs, f32 accumulation (MXU bf16-native path).
    h = jnp.dot(w2_ref[...], h.astype(jnp.bfloat16),
                preferred_element_type=jnp.float32) + b2_ref[...]    # (256, t)
    h = jnp.maximum(h, 0.0)
    h = jnp.dot(w3_ref[...], h.astype(jnp.bfloat16),
                preferred_element_type=jnp.float32) + b3_ref[...]    # (128, t)
    h = jnp.maximum(h, 0.0)

    # Small output layer stays f32.
    res = jnp.dot(w4_ref[...], h, preferred_element_type=jnp.float32) + b4_ref[...]

    o_ref[...] = lin + res                                           # (4, t) lane-dense


def _round_up(x, m):
    return ((x + m - 1) // m) * m


def _pick_tile(hw, n_batch, t_max=4096):
    """Pixel tile: multiple of 128, <= t_max, and >= 2 total grid steps when possible."""
    t_max = max(128, (t_max // 128) * 128)
    t = _round_up(hw, 128) if hw <= t_max else t_max
    # Keep at least 2 parallel grid steps so a v7x chip's second TC is not idle.
    while n_batch * ((_round_up(hw, t)) // t) < 2 and t > 128:
        t = max(128, ((t // 2 + 127) // 128) * 128)
    return t


def neural_network_forward(images_nchw, params, *, t_hw_max=4096):
    """images_nchw: (N, 9, H, W) float32.  Returns (N, 4, H, W) float32."""
    N, Cin, H, W = images_nchw.shape
    assert Cin == 9
    HW = H * W

    t_hw = _pick_tile(HW, N, t_hw_max)
    HW_pad = _round_up(HW, t_hw)
    n_hw = HW_pad // t_hw

    # NCHW consumed directly: reshape (+ zero-pad the pixel axis to a tile multiple).
    x = images_nchw.reshape(N, Cin, HW).astype(jnp.float32)
    if HW_pad != HW:
        x = jnp.pad(x, ((0, 0), (0, 0), (0, HW_pad - HW)))

    c, w1, b1, w2, b2, w3, b3, w4, b4 = params

    # channels-on-sublane layout: weights as (cout, cin); 1/255 folded into w1;
    # linear-part matrix fused under w1 (rows 64:68).
    cT = jnp.zeros((4, 9), jnp.float32).at[:, :3].set(c.T)
    w1t = (w1.T * jnp.float32(1.0 / 255.0)).astype(jnp.float32)      # (64, 9)
    w1a = jnp.concatenate([w1t, cT], axis=0)                         # (68, 9)
    w2t = w2.T.astype(jnp.bfloat16)                                  # (256, 64)  bf16
    w3t = w3.T.astype(jnp.bfloat16)                                  # (128, 256) bf16
    w4t = w4.T.astype(jnp.float32)                                   # (4, 128)
    b1c = b1.reshape(-1, 1).astype(jnp.float32)
    b2c = b2.reshape(-1, 1).astype(jnp.float32)
    b3c = b3.reshape(-1, 1).astype(jnp.float32)
    b4c = b4.reshape(-1, 1).astype(jnp.float32)

    def full(a):
        return pl.BlockSpec(a.shape, lambda n, i: (0, 0))

    # Cost estimate (advisory, for XLA scheduling around the custom call).
    flops = 2 * N * HW_pad * (68 * 9 + 64 * 256 + 256 * 128 + 128 * 4)
    weight_bytes = (w1a.size + b1c.size + b2c.size + b3c.size + b4c.size
                    + w4t.size) * 4 + (w2t.size + w3t.size) * 2
    bytes_accessed = 4 * N * HW_pad * (9 + 4) + weight_bytes

    # VMEM budget: per-step intermediates + double-buffered I/O tiles + weights,
    # clamped to [32 MiB, 48 MiB] (48 MiB keeps headroom on v7x's 64 MiB VMEM/TC).
    per_step = (2 * 9 * t_hw * 4            # input tile, double-buffered
                + 2 * 4 * t_hw * 4          # output tile, double-buffered
                + (68 + 256 + 128 + 4) * t_hw * 4   # f32 intermediates
                + (64 + 256) * t_hw * 2)    # bf16 casts of h1 / h2
    vmem_limit = int(min(max(per_step * 3 // 2 + 2 * weight_bytes, 32 << 20), 48 << 20))

    out = pl.pallas_call(
        _mlp_kernel,
        out_shape=jax.ShapeDtypeStruct((N, 4, HW_pad), jnp.float32),
        grid_spec=pltpu.PrefetchScalarGridSpec(
            num_scalar_prefetch=0,
            grid=(N, n_hw),
            in_specs=[
                pl.BlockSpec((pl.Squeezed(), Cin, t_hw), lambda n, i: (n, 0, i)),
                full(w1a), full(b1c),
                full(w2t), full(b2c),
                full(w3t), full(b3c),
                full(w4t), full(b4c),
            ],
            out_specs=pl.BlockSpec((pl.Squeezed(), 4, t_hw), lambda n, i: (n, 0, i)),
        ),
        compiler_params=pltpu.CompilerParams(
            dimension_semantics=("parallel", "parallel"),
            vmem_limit_bytes=vmem_limit),
        cost_estimate=pl.CostEstimate(
            flops=flops, transcendentals=0, bytes_accessed=bytes_accessed),
    )(x, w1a, b1c, w2t, b2c, w3t, b3c, w4t, b4c)

    return out[:, :, :HW].reshape(N, 4, H, W)


def make_params(key):
    """Deterministic parameter init mimicking nn.Conv2d default (uniform fan-in)."""
    def conv_init(k, cin, cout):
        k1, k2 = jax.random.split(k)
        bound = 1.0 / np.sqrt(cin)  # 1x1 kernel -> fan_in = cin
        w = jax.random.uniform(k1, (cin, cout), jnp.float32, -bound, bound)
        b = jax.random.uniform(k2, (cout,), jnp.float32, -bound, bound)
        return w, b

    k1, k2, k3, k4 = jax.random.split(key, 4)
    w1, b1 = conv_init(k1, 9, 64)
    w2, b2 = conv_init(k2, 64, 256)
    w3, b3 = conv_init(k3, 256, 128)
    w4, b4 = conv_init(k4, 128, 4)

    # Fixed analytic matrix C = (B @ inv(A)).T  (shape 3x4)
    A = np.array([[1, np.cos(0), np.sin(0)],
                  [1, np.cos(6 * np.pi / 7), np.sin(6 * np.pi / 7)],
                  [1, np.cos(8 * np.pi / 7), np.sin(8 * np.pi / 7)]])
    B = np.array([[1, np.cos(2 * np.pi / 7), np.sin(2 * np.pi / 7)],
                  [1, np.cos(4 * np.pi / 7), np.sin(4 * np.pi / 7)],
                  [1, np.cos(10 * np.pi / 7), np.sin(10 * np.pi / 7)],
                  [1, np.cos(12 * np.pi / 7), np.sin(12 * np.pi / 7)]])
    C = jnp.asarray(np.matmul(B, np.linalg.inv(A)).T.astype(np.float32))  # (3, 4)

    # TODO(synk): the F matrix from __init__ is never used in forward(); omitted.
    return (C, w1, b1, w2, b2, w3, b3, w4, b4)


def reference_forward(images_nchw, params):
    """Pure-JAX f32 reference replicating the PyTorch forward."""
    c, w1, b1, w2, b2, w3, b3, w4, b4 = params
    nhwc = jnp.transpose(images_nchw, (0, 2, 3, 1))
    lin = jnp.matmul(nhwc[..., :3], c)                        # (N,H,W,4)
    xs = nhwc / 255.0
    h = jax.nn.relu(jnp.matmul(xs, w1) + b1)
    h = jax.nn.relu(jnp.matmul(h, w2) + b2)
    h = jax.nn.relu(jnp.matmul(h, w3) + b3)
    res = jnp.matmul(h, w4) + b4
    return jnp.transpose(lin + res, (0, 3, 1, 2))


if __name__ == "__main__":
    key = jax.random.PRNGKey(0)
    kp, kx = jax.random.split(key)
    params = make_params(kp)

    # Small NCHW input consistent with the module: batch=2, 9 channels, 16x16 spatial.
    images = jax.random.uniform(kx, (2, 9, 16, 16), jnp.float32, 0.0, 255.0)

    out = neural_network_forward(images, params)
    out = jax.block_until_ready(out)

    ref = reference_forward(images, params)
    # Layers 2/3 run with bf16 inputs (f32 accumulation), so the tolerance is
    # loosened vs. the all-f32 reference.
    np.testing.assert_allclose(np.asarray(out), np.asarray(ref), rtol=2e-2, atol=5e-2)

    print("KERNEL_OK")
</pallas_src>

<mosaic_0001>
module attributes {stable_mosaic.version = 11 : i64} {
  func.func @_mlp_kernel(%arg0: i32, %arg1: i32, %arg2: memref<1x9x256xf32, #tpu.memory_space<vmem>>, %arg3: memref<68x9xf32, #tpu.memory_space<vmem>>, %arg4: memref<64x1xf32, #tpu.memory_space<vmem>>, %arg5: memref<256x64xbf16, #tpu.memory_space<vmem>>, %arg6: memref<256x1xf32, #tpu.memory_space<vmem>>, %arg7: memref<128x256xbf16, #tpu.memory_space<vmem>>, %arg8: memref<128x1xf32, #tpu.memory_space<vmem>>, %arg9: memref<4x128xf32, #tpu.memory_space<vmem>>, %arg10: memref<4x1xf32, #tpu.memory_space<vmem>>, %arg11: memref<1x4x256xf32, #tpu.memory_space<vmem>>) attributes {dimension_semantics = [#tpu.dimension_semantics<parallel>, #tpu.dimension_semantics<parallel>], iteration_bounds = array<i64: 2, 1>, scalar_prefetch = 0 : i64, scratch_operands = 0 : i64, tpu.core_type = #tpu.core_type<tc>, window_params = [{transform_indices = @transform_0, window_bounds = array<i64: 1, 9, 256>}, {pipeline_mode = #tpu.pipeline_mode<synchronous>, transform_indices = @transform_1, window_bounds = array<i64: 68, 9>}, {pipeline_mode = #tpu.pipeline_mode<synchronous>, transform_indices = @transform_2, window_bounds = array<i64: 64, 1>}, {pipeline_mode = #tpu.pipeline_mode<synchronous>, transform_indices = @transform_3, window_bounds = array<i64: 256, 64>}, {pipeline_mode = #tpu.pipeline_mode<synchronous>, transform_indices = @transform_4, window_bounds = array<i64: 256, 1>}, {pipeline_mode = #tpu.pipeline_mode<synchronous>, transform_indices = @transform_5, window_bounds = array<i64: 128, 256>}, {pipeline_mode = #tpu.pipeline_mode<synchronous>, transform_indices = @transform_6, window_bounds = array<i64: 128, 1>}, {pipeline_mode = #tpu.pipeline_mode<synchronous>, transform_indices = @transform_7, window_bounds = array<i64: 4, 128>}, {pipeline_mode = #tpu.pipeline_mode<synchronous>, transform_indices = @transform_8, window_bounds = array<i64: 4, 1>}, {transform_indices = @transform_9, window_bounds = array<i64: 1, 4, 256>}]} {
    %c0 = arith.constant 0 : index
    %c0_0 = arith.constant 0 : index
    %c0_1 = arith.constant 0 : index
    %0 = vector.load %arg2[%c0, %c0_0, %c0_1] : memref<1x9x256xf32, #tpu.memory_space<vmem>>, vector<1x9x256xf32>
    %1 = vector.shape_cast %0 : vector<1x9x256xf32> to vector<9x256xf32>
    %c0_2 = arith.constant 0 : index
    %c0_3 = arith.constant 0 : index
    %2 = vector.load %arg3[%c0_2, %c0_3] : memref<68x9xf32, #tpu.memory_space<vmem>>, vector<68x9xf32>
    %cst = arith.constant dense<0.000000e+00> : vector<68x256xf32>
    %3 = tpu.matmul %2, %1, %cst {dimension_numbers = #tpu.dot_dimension_numbers<[1], [0], [0], [1], [0, 0, 1, 1], [], []>} : vector<68x9xf32>, vector<9x256xf32>, vector<68x256xf32> -> vector<68x256xf32>
    %4 = vector.extract_strided_slice %3 {offsets = [64, 0], sizes = [4, 256], strides = [1, 1]} : vector<68x256xf32> to vector<4x256xf32>
    %5 = vector.extract_strided_slice %3 {offsets = [0, 0], sizes = [64, 256], strides = [1, 1]} : vector<68x256xf32> to vector<64x256xf32>
    %c0_4 = arith.constant 0 : index
    %c0_5 = arith.constant 0 : index
    %6 = vector.load %arg4[%c0_4, %c0_5] : memref<64x1xf32, #tpu.memory_space<vmem>>, vector<64x1xf32>
    %7 = vector.broadcast %6 : vector<64x1xf32> to vector<64x256xf32>
    %8 = arith.addf %5, %7 : vector<64x256xf32>
    %cst_6 = arith.constant 0.000000e+00 : f32
    %9 = vector.broadcast %cst_6 : f32 to vector<64x256xf32>
    %10 = arith.maximumf %8, %9 : vector<64x256xf32>
    %c0_7 = arith.constant 0 : index
    %c0_8 = arith.constant 0 : index
    %11 = vector.load %arg5[%c0_7, %c0_8] : memref<256x64xbf16, #tpu.memory_space<vmem>>, vector<256x64xbf16>
    %12 = arith.truncf %10 : vector<64x256xf32> to vector<64x256xbf16>
    %cst_9 = arith.constant dense<0.000000e+00> : vector<256x256xf32>
    %13 = tpu.matmul %11, %12, %cst_9 {dimension_numbers = #tpu.dot_dimension_numbers<[1], [0], [0], [1], [0, 0, 1, 1], [], []>} : vector<256x64xbf16>, vector<64x256xbf16>, vector<256x256xf32> -> vector<256x256xf32>
    %c0_10 = arith.constant 0 : index
    %c0_11 = arith.constant 0 : index
    %14 = vector.load %arg6[%c0_10, %c0_11] : memref<256x1xf32, #tpu.memory_space<vmem>>, vector<256x1xf32>
    %15 = vector.broadcast %14 : vector<256x1xf32> to vector<256x256xf32>
    %16 = arith.addf %13, %15 : vector<256x256xf32>
    %cst_12 = arith.constant 0.000000e+00 : f32
    %17 = vector.broadcast %cst_12 : f32 to vector<256x256xf32>
    %18 = arith.maximumf %16, %17 : vector<256x256xf32>
    %c0_13 = arith.constant 0 : index
    %c0_14 = arith.constant 0 : index
    %19 = vector.load %arg7[%c0_13, %c0_14] : memref<128x256xbf16, #tpu.memory_space<vmem>>, vector<128x256xbf16>
    %20 = arith.truncf %18 : vector<256x256xf32> to vector<256x256xbf16>
    %cst_15 = arith.constant dense<0.000000e+00> : vector<128x256xf32>
    %21 = tpu.matmul %19, %20, %cst_15 {dimension_numbers = #tpu.dot_dimension_numbers<[1], [0], [0], [1], [0, 0, 1, 1], [], []>} : vector<128x256xbf16>, vector<256x256xbf16>, vector<128x256xf32> -> vector<128x256xf32>
    %c0_16 = arith.constant 0 : index
    %c0_17 = arith.constant 0 : index
    %22 = vector.load %arg8[%c0_16, %c0_17] : memref<128x1xf32, #tpu.memory_space<vmem>>, vector<128x1xf32>
    %23 = vector.broadcast %22 : vector<128x1xf32> to vector<128x256xf32>
    %24 = arith.addf %21, %23 : vector<128x256xf32>
    %cst_18 = arith.constant 0.000000e+00 : f32
    %25 = vector.broadcast %cst_18 : f32 to vector<128x256xf32>
    %26 = arith.maximumf %24, %25 : vector<128x256xf32>
    %c0_19 = arith.constant 0 : index
    %c0_20 = arith.constant 0 : index
    %27 = vector.load %arg9[%c0_19, %c0_20] : memref<4x128xf32, #tpu.memory_space<vmem>>, vector<4x128xf32>
    %cst_21 = arith.constant dense<0.000000e+00> : vector<4x256xf32>
    %28 = tpu.matmul %27, %26, %cst_21 {dimension_numbers = #tpu.dot_dimension_numbers<[1], [0], [0], [1], [0, 0, 1, 1], [], []>} : vector<4x128xf32>, vector<128x256xf32>, vector<4x256xf32> -> vector<4x256xf32>
    %c0_22 = arith.constant 0 : index
    %c0_23 = arith.constant 0 : index
    %29 = vector.load %arg10[%c0_22, %c0_23] : memref<4x1xf32, #tpu.memory_space<vmem>>, vector<4x1xf32>
    %30 = vector.broadcast %29 : vector<4x1xf32> to vector<4x256xf32>
    %31 = arith.addf %28, %30 : vector<4x256xf32>
    %32 = arith.addf %4, %31 : vector<4x256xf32>
    %c0_24 = arith.constant 0 : index
    %c0_25 = arith.constant 0 : index
    %c0_26 = arith.constant 0 : index
    %33 = vector.load %arg11[%c0_24, %c0_25, %c0_26] : memref<1x4x256xf32, #tpu.memory_space<vmem>>, vector<1x4x256xf32>
    %34 = vector.shape_cast %33 : vector<1x4x256xf32> to vector<4x256xf32>
    %35 = vector.shape_cast %32 : vector<4x256xf32> to vector<1x4x256xf32>
    tpu.vector_store %arg11[%c0_24, %c0_25, %c0_26], %35 {strides = array<i32>} : memref<1x4x256xf32, #tpu.memory_space<vmem>>, vector<1x4x256xf32>,
    return
  }
  func.func @transform_0(%arg0: i32, %arg1: i32) -> (i32, i32, i32) {
    %c0_i32 = arith.constant 0 : i32
    %c0_i32_0 = arith.constant 0 : i32
    return %arg0, %c0_i32, %arg1 : i32, i32, i32
  }
  func.func @transform_1(%arg0: i32, %arg1: i32) -> (i32, i32) {
    %c0_i32 = arith.constant 0 : i32
    %c0_i32_0 = arith.constant 0 : i32
    %c0_i32_1 = arith.constant 0 : i32
    return %c0_i32, %c0_i32_0 : i32, i32
  }
  func.func @transform_2(%arg0: i32, %arg1: i32) -> (i32, i32) {
    %c0_i32 = arith.constant 0 : i32
    %c0_i32_0 = arith.constant 0 : i32
    %c0_i32_1 = arith.constant 0 : i32
    return %c0_i32, %c0_i32_0 : i32, i32
  }
  func.func @transform_3(%arg0: i32, %arg1: i32) -> (i32, i32) {
    %c0_i32 = arith.constant 0 : i32
    %c0_i32_0 = arith.constant 0 : i32
    %c0_i32_1 = arith.constant 0 : i32
    return %c0_i32, %c0_i32_0 : i32, i32
  }
  func.func @transform_4(%arg0: i32, %arg1: i32) -> (i32, i32) {
    %c0_i32 = arith.constant 0 : i32
    %c0_i32_0 = arith.constant 0 : i32
    %c0_i32_1 = arith.constant 0 : i32
    return %c0_i32, %c0_i32_0 : i32, i32
  }
  func.func @transform_5(%arg0: i32, %arg1: i32) -> (i32, i32) {
    %c0_i32 = arith.constant 0 : i32
    %c0_i32_0 = arith.constant 0 : i32
    %c0_i32_1 = arith.constant 0 : i32
    return %c0_i32, %c0_i32_0 : i32, i32
  }
  func.func @transform_6(%arg0: i32, %arg1: i32) -> (i32, i32) {
    %c0_i32 = arith.constant 0 : i32
    %c0_i32_0 = arith.constant 0 : i32
    %c0_i32_1 = arith.constant 0 : i32
    return %c0_i32, %c0_i32_0 : i32, i32
  }
  func.func @transform_7(%arg0: i32, %arg1: i32) -> (i32, i32) {
    %c0_i32 = arith.constant 0 : i32
    %c0_i32_0 = arith.constant 0 : i32
    %c0_i32_1 = arith.constant 0 : i32
    return %c0_i32, %c0_i32_0 : i32, i32
  }
  func.func @transform_8(%arg0: i32, %arg1: i32) -> (i32, i32) {
    %c0_i32 = arith.constant 0 : i32
    %c0_i32_0 = arith.constant 0 : i32
    %c0_i32_1 = arith.constant 0 : i32
    return %c0_i32, %c0_i32_0 : i32, i32
  }
  func.func @transform_9(%arg0: i32, %arg1: i32) -> (i32, i32, i32) {
    %c0_i32 = arith.constant 0 : i32
    %c0_i32_0 = arith.constant 0 : i32
    return %arg0, %c0_i32, %arg1 : i32, i32, i32
  }
}

</mosaic_0001>

<bundles_post_ra>
// kernel: tpu_custom_call.1
= control target key start
LH: loop header
LB: loop body
LE: loop exit
PB: predicated region body
PF: predicated region fallthrough
CT: control target
= control target key end

     0   :  { %14 = vsyncpa [#allocation3], 0  ;;  %s2587_s0 = inlined_call_operand.vmem [shape: f32[2,9,256], index: 0, kind: input, shape index: {}]   ;;  %s2588_s1 = inlined_call_operand.vmem [shape: f32[68,9], index: 1, kind: input, shape index: {}]   ;;  %s2589_s2 = inlined_call_operand.vmem [shape: f32[64,1], index: 2, kind: input, shape index: {}]   ;;  %s2590_s3 = inlined_call_operand.vmem [shape: bf16[256,64], index: 3, kind: input, shape index: {}]   ;;  %s2591_s4 = inlined_call_operand.vmem [shape: f32[256,1], index: 4, kind: input, shape index: {}]   ;;  %s2592_s5 = inlined_call_operand.vmem [shape: bf16[128,256], index: 5, kind: input, shape index: {}]   ;;  %s2593_s6 = inlined_call_operand.vmem [shape: f32[128,1], index: 6, kind: input, shape index: {}]   ;;  %s2594_s7 = inlined_call_operand.vmem [shape: f32[4,128], index: 7, kind: input, shape index: {}]   ;;  %s2595_s8 = inlined_call_operand.vmem [shape: f32[4,1], index: 8, kind: input, shape index: {}]   ;;  %s2596_s9 = inlined_call_operand.hbm [shape: f32[2,4,256], index: 9, kind: output, shape index: {}]  }
   0x1   :  { %16 = vsyncpa [#allocation3 + $0x1], 0  ;;  %s2125_s30 = smov 0   ;;  %s2127_s10 = smov 0  }
   0x2   :  { %s2129_s11 = smov 0   ;;  %s2131_s12 = smov 0  }
   0x3   :  { %s2133_s13 = smov 0   ;;  %s2135_s14 = smov 0  }
   0x4 LB: > { %s1775_s15 = sadd.s32 4294967295, %s2069_s14   ;;  %s1776_s16 = sadd.s32 4294967294, %s2069_s14   ;;  %s2069_s14 = sphi %s2135_s14, %s22_s14   ;;  %s2065_s13 = sphi %s2133_s13, %s2603_s13   ;;  %s2061_s12 = sphi %s2131_s12, %s2602_s12   ;;  %s2057_s11 = sphi %s2129_s11, %s2601_s11   ;;  %s2053_s10 = sphi %s2127_s10, %s2600_s10   ;;  %s2049_s30 = sphi %s2125_s30, %s2599_s30  }
   0x5   : > { %s34_s17 = sadd.s32 1, %s2065_s13  ;;  %s239_s18 = sadd.s32 1, %s2057_s11 }
   0x6   : > { %p36_p0 = scmp.ge.s32.totalorder %s34_s17, 2  ;;  %p249_p1 = scmp.ne.s32.totalorder %s2057_s11, %s2053_s10 }
   0x7   : > { %p250_p2 = scmp.eq.s32.totalorder %s1775_s15, 1  ;;  %p255_p3 = scmp.ne.s32.totalorder %s2053_s10, %s2049_s30 }
   0x8   : > { %s2605_s17 = smov (%p36_p0, %s34_s17), 0  ;;  %p256_p5 = scmp.eq.s32.totalorder %s1776_s16, 1 }
   0x9   : > { %p2165_p4 = por %p250_p2, %p249_p1  ;;  %s234_s20 = ssub.s32 %s2065_s13, %s2605_s17 }
   0xa   : > { %p1779_p6 = scmp.ge.s32.totalorder %s2069_s14, 1  ;;  %p237_p7 = scmp.eq.s32.totalorder %s234_s20, 0 }
   0xb   : > { %p2172_p8 = por %p256_p5, %p255_p3  ;;  %p311_p9 = scmp.lt.s32.totalorder %s2069_s14, 3 }
   0xc   : > { %s2178_s22 = scalar_select %p237_p7, %s2057_s11, %s239_s18  }
   0xd   : > { %p312_p10 = pnand %p1779_p6, %p311_p9 }
   0xe   : > { %v530_v0 = vld [vmem:[%s2589_s2] sm:$0xff] (!%p312_p10)  ;;  %v532_v1 = vld [vmem:[%s2589_s2 + $0x10] sm:$0xff] (!%p312_p10)  ;;  %p352_p11 = scmp.lt.s32.totalorder (!%p312_p10), %s2061_s12, 1  ;;  %v2071_v2 = vmov (!%p312_p10), 0   ;;  %vm404_vm0 = vcmask (!%p312_p10), 1040384   ;;  %v531_v3 = vld [vmem:[%s2589_s2 + $0x8] sm:$0xff] (!%p312_p10) }
   0xf   : > { %315 = sbr.rel (%p312_p10) target bundleno = 1141 (0x475), region = 56  ;;  %1949 = vset.pattern.permute.xlu0 (!%p312_p10), %v2071_v2  ;;  %1950 = vset.pattern.permute.xlu1 (!%p312_p10), %v2071_v2  ;;  %v533_v4 = vld [vmem:[%s2589_s2 + $0x18] sm:$0xff] (!%p312_p10)  ;;  %v2072_v5 = vmov (!%p312_p10), 0.0   ;;  %vm2073_vm1 = vmmov (!%p312_p10), 1   ;;  %v534_v10 = vld [vmem:[%s2589_s2 + $0x20] sm:$0xff] (!%p312_p10)  ;;  %v535_v13 = vld [vmem:[%s2589_s2 + $0x28] sm:$0xff] (!%p312_p10) }
  0x10   : > { %540 = vperm.xlu0 (!%p312_p10), %1949, %v530_v0   ;;  %550 = vperm.xlu1 (!%p312_p10), %1950, %v532_v1   ;;  %vm1850_vm2 = vmpackc.low (!%p312_p10), %vm404_vm0, %vm2073_vm1  ;;  %v367_v14 = vld [vmem:[%s2588_s1] sm:$0xff] (!%p312_p10)  ;;  %vm376_vm3 = vcmask (!%p312_p10), 72704   ;;  %v536_v15 = vld [vmem:[%s2589_s2 + $0x30] sm:$0xff] (!%p312_p10)  ;;  %vm922_vm4 = vcmask (!%p312_p10), 523264   ;;  %s1848_s15 = sshll.u32 (!%p312_p10), %s2061_s12, 7 }
  0x11   : > { %475 = vmatprep.mubr.f32.mxu0 (!%p312_p10), %v2072_v5  ;;  %1003 = vmatprep.mubr.bf16.mxu1 (!%p312_p10), %v2071_v2  ;;  %v537_v16 = vld [vmem:[%s2589_s2 + $0x38] sm:$0xff] (!%p312_p10)  ;;  %v368_v17 = vld [vmem:[%s2588_s1 + $0x8] sm:$0xff] (!%p312_p10)  ;;  %v650_v18 = vld [vmem:[%s2591_s4] sm:$0xff] (!%p312_p10) }
  0x12   : > { %v651_v19 = vld [vmem:[%s2591_s4 + $0x8] sm:$0xff] (!%p312_p10)  ;;  %v369_v20 = vld [vmem:[%s2588_s1 + $0x10] sm:$0xff] (!%p312_p10)  ;;  %v653_v22 = vld [vmem:[%s2591_s4 + $0x18] sm:$0xff] (!%p312_p10) }
  0x13   : > { %v652_v21 = vld [vmem:[%s2591_s4 + $0x10] sm:$0xff] (!%p312_p10)  ;;  %v370_v23 = vld [vmem:[%s2588_s1 + $0x18] sm:$0xff] (!%p312_p10)  ;;  %v654_v24 = vld [vmem:[%s2591_s4 + $0x20] sm:$0xff] (!%p312_p10) }
  0x14   : > { %545 = vperm.xlu0 (!%p312_p10), %1949, %v531_v3   ;;  %555 = vperm.xlu1 (!%p312_p10), %1950, %v533_v4   ;;  %v655_v25 = vld [vmem:[%s2591_s4 + $0x28] sm:$0xff] (!%p312_p10)  ;;  %v371_v26 = vld [vmem:[%s2588_s1 + $0x20] sm:$0xff] (!%p312_p10)  ;;  %v656_v27 = vld [vmem:[%s2591_s4 + $0x30] sm:$0xff] (!%p312_p10) }
  0x15   : > { %v657_v28 = vld [vmem:[%s2591_s4 + $0x38] sm:$0xff] (!%p312_p10)  ;;  %v372_v29 = vld [vmem:[%s2588_s1 + $0x28] sm:$0xff] (!%p312_p10)  ;;  %v658_v30 = vld [vmem:[%s2591_s4 + $0x40] sm:$0xff] (!%p312_p10) }
  0x16   : > { %s353_s27 = scalar_select %p352_p11, %s2061_s12, 1  ;;  %v659_v31 = vld [vmem:[%s2591_s4 + $0x48] sm:$0xff]  ;;  %v373_v32 = vld [vmem:[%s2588_s1 + $0x30] sm:$0xff]  ;;  %v661_v34 = vld [vmem:[%s2591_s4 + $0x58] sm:$0xff] }
  0x17   : > { %v660_v33 = vld [vmem:[%s2591_s4 + $0x50] sm:$0xff]  ;;  %v374_v35 = vld [vmem:[%s2588_s1 + $0x38] sm:$0xff]  ;;  %v662_v36 = vld [vmem:[%s2591_s4 + $0x60] sm:$0xff]  ;;  %s2074_s12 = smov [#allocation2]  }
  0x18   : > { %s1847_s18 = sshll.u32 %s353_s27, 5  ;;  %560 = vperm.xlu0 %1949, %v534_v10   ;;  %565 = vperm.xlu1 %1950, %v535_v13   ;;  %v663_v37 = vld [vmem:[%s2591_s4 + $0x68] sm:$0xff]  ;;  %v664_v38 = vld [vmem:[%s2591_s4 + $0x70] sm:$0xff]  ;;  %v665_v39 = vld [vmem:[%s2591_s4 + $0x78] sm:$0xff]  ;;  %s348_s27 = sand.u32 1, %s2053_s10  }
  0x19   : > { %s359_s24 = scalar_lea.vmem %s2587_s0, %s1847_s18  ;;  %v666_v40 = vld [vmem:[%s2591_s4 + $0x80] sm:$0xff]  ;;  %v667_v41 = vld [vmem:[%s2591_s4 + $0x88] sm:$0xff]  ;;  %v668_v42 = vld [vmem:[%s2591_s4 + $0x90] sm:$0xff]  ;;  %s1780_s29 = sshll.u32 %s348_s27, 3 }
  0x1a   : > { %v364_v6 = vld [vmem:[%s359_s24 + $0x8] sm:$0xff]  ;;  %v366_v7 = vld [vmem:[%s359_s24 + $0x18] sm:$0x1]  ;;  %v363_v8 = vld [vmem:[%s359_s24] sm:$0xff]  ;;  %s350_s16 = scalar_lea.vmem [#allocation2], %s1780_s29  ;;  %s1683_s25 = scalar_lea.sflag [#allocation3], %s348_s27 }
  0x1b   : > { %v1849_v9 = vpack.c.bf16 %v366_v7, %v364_v6  ;;  %v365_v11 = vld [vmem:[%s359_s24 + $0x10] sm:$0x1]  ;;  %v669_v43 = vld [vmem:[%s2591_s4 + $0x98] sm:$0xff]  ;;  %v670_v44 = vld [vmem:[%s2591_s4 + $0xa0] sm:$0xff]  ;;  %s1699_s18 = sshll.u32 %s350_s16, 4  ;;  %s2540_s24 = scalar_lea.hbm %s2596_s9, %s1848_s15  ;;  %s2542_s18 = int_to_ptr.vmem [resolvable:$true] %s1699_s18 }
  0x1c   : > { %v1852_v12 = vpack.c.bf16 %v365_v11, %v363_v8  ;;  %570 = vperm.xlu0 %1949, %v536_v15   ;;  %575 = vperm.xlu1 %1950, %v537_v16   ;;  %v671_v45 = vld [vmem:[%s2591_s4 + $0xa8] sm:$0xff]  ;;  %v672_v46 = vld [vmem:[%s2591_s4 + $0xb0] sm:$0xff]  ;;  %v673_v47 = vld [vmem:[%s2591_s4 + $0xb8] sm:$0xff]  ;;  %s1991_s26 = scalar_lea.vmem %s2542_s18, 128  ;;  %s1995_s28 = sshll.u32 %s2074_s12, 4  ;;  %s1996_s28 = int_to_ptr.vmem [resolvable:$false] %s1995_s28 }
  0x1d   : > { %1851 = vmatprep.subr.msk.bf16.mxu0 %vm1850_vm2, %v1849_v9  ;;  %v674_v48 = vld [vmem:[%s2591_s4 + $0xc0] sm:$0xff]  ;;  %v675_v49 = vld [vmem:[%s2591_s4 + $0xc8] sm:$0xff]  ;;  %v676_v50 = vld [vmem:[%s2591_s4 + $0xd0] sm:$0xff]  ;;  %p1992_p12 = scmp.ne.s32.totalorder %s2542_s18, %s1991_s26  ;;  %s1997_s29 = scalar_lea.vmem %s1996_s28, 256 }
  0x1e   : > { %1854 = vmatpush1.bf16.msk.msra.mxu0 %vm1850_vm2, %v1852_v12  ;;  %v677_v51 = vld [vmem:[%s2591_s4 + $0xd8] sm:$0xff]  ;;  %v678_v52 = vld [vmem:[%s2591_s4 + $0xe0] sm:$0xff]  ;;  %v679_v53 = vld [vmem:[%s2591_s4 + $0xe8] sm:$0xff]  ;;  %p1998_p1 = scmp.lt.s32.totalorder %s2542_s18, %s1996_s28  ;;  %p1999_p2 = scmp.lt.s32.totalorder %s1997_s29, %s1991_s26 }
  0x1f   : > { %v680_v54 = vld [vmem:[%s2591_s4 + $0xf0] sm:$0xff]  ;;  %v681_v55 = vld [vmem:[%s2591_s4 + $0xf8] sm:$0xff]  ;;  %v1276_v56 = vld [vmem:[%s2593_s6] sm:$0xff]  ;;  %p1993_p13 = pnand %p1992_p12, %p2165_p4 }
  0x20   : > { %684 = vperm.xlu0 %1949, %v650_v18   ;;  %689 = vperm.xlu1 %1950, %v651_v19   ;;  %v1277_v57 = vld [vmem:[%s2593_s6 + $0x8] sm:$0xff]  ;;  %v1278_v58 = vld [vmem:[%s2593_s6 + $0x10] sm:$0xff]  ;;  %v1279_v59 = vld [vmem:[%s2593_s6 + $0x18] sm:$0xff]  ;;  %p2000_p3 = por %p1999_p2, %p1998_p1 }
  0x21   : > { %1785 = vmatmul.mubr.msk.f32.vlgmr.msra.gmra.mrb[0].mxu0 %vm376_vm3, %v367_v14  ;;  %v1280_v60 = vld [vmem:[%s2593_s6 + $0x20] sm:$0xff]  ;;  %v1281_v61 = vld [vmem:[%s2593_s6 + $0x28] sm:$0xff]  ;;  %v1282_v62 = vld [vmem:[%s2593_s6 + $0x30] sm:$0xff]  ;;  %p1994_p0 = pneg %p1993_p13 }
  0x22   : > { %481 = vmatprep.mubr.f32.mxu0 %v2072_v5  ;;  %v1283_v63 = vld [vmem:[%s2593_s6 + $0x38] sm:$0xff]  ;;  %v1284_v0 = vld [vmem:[%s2593_s6 + $0x40] sm:$0xff]  ;;  %v1285_v1 = vld [vmem:[%s2593_s6 + $0x48] sm:$0xff] }
  0x23   : > { %v1286_v3 = vld [vmem:[%s2593_s6 + $0x50] sm:$0xff]  ;;  %v1287_v4 = vld [vmem:[%s2593_s6 + $0x58] sm:$0xff]  ;;  %v1288_v6 = vld [vmem:[%s2593_s6 + $0x60] sm:$0xff]  ;;  %p2001_p5 = pnand %p2000_p3, %p1994_p0 }
  0x24   : > { %694 = vperm.xlu0 %1949, %v652_v21   ;;  %699 = vperm.xlu1 %1950, %v653_v22   ;;  %v1289_v7 = vld [vmem:[%s2593_s6 + $0x68] sm:$0xff]  ;;  %v1290_v8 = vld [vmem:[%s2593_s6 + $0x70] sm:$0xff]  ;;  %v1291_v9 = vld [vmem:[%s2593_s6 + $0x78] sm:$0xff] }
  0x25   : > { %1786 = vmatmul.mubr.msk.f32.gmra.mrb[2].mxu0 %vm376_vm3, %v368_v17  ;;  %v1598_v10 = vld [vmem:[%s2595_s8] sm:$0xf] }
  0x26   : > { %487 = vmatprep.mubr.f32.mxu0 %v2072_v5 }
  0x28   : > { %704 = vperm.xlu0 %1949, %v654_v24   ;;  %709 = vperm.xlu1 %1950, %v655_v25  }
  0x29   : > { %1787 = vmatmul.mubr.msk.f32.gmra.mrb[4].mxu0 %vm376_vm3, %v369_v20 }
  0x2a   : > { %493 = vmatprep.mubr.f32.mxu0 %v2072_v5 }
  0x2c   : > { %714 = vperm.xlu0 %1949, %v656_v27   ;;  %719 = vperm.xlu1 %1950, %v657_v28  }
  0x2d   : > { %1788 = vmatmul.mubr.msk.f32.gmra.mrb[6].mxu0 %vm376_vm3, %v370_v23 }
  0x2e   : > { %499 = vmatprep.mubr.f32.mxu0 %v2072_v5 }
  0x30   : > { %724 = vperm.xlu0 %1949, %v658_v30   ;;  %729 = vperm.xlu1 %1950, %v659_v31  }
  0x31   : > { %1789 = vmatmul.mubr.msk.f32.gmra.mrb[8].mxu0 %vm376_vm3, %v371_v26 }
  0x32   : > { %505 = vmatprep.mubr.f32.mxu0 %v2072_v5 }
  0x34   : > { %734 = vperm.xlu0 %1949, %v660_v33   ;;  %739 = vperm.xlu1 %1950, %v661_v34  }
  0x35   : > { %1790 = vmatmul.mubr.msk.f32.gmra.mrb[10].mxu0 %vm376_vm3, %v372_v29 }
  0x36   : > { %511 = vmatprep.mubr.f32.mxu0 %v2072_v5 }
  0x38   : > { %744 = vperm.xlu0 %1949, %v662_v36   ;;  %749 = vperm.xlu1 %1950, %v663_v37  }
  0x39   : > { %1791 = vmatmul.mubr.msk.f32.gmra.mrb[12].mxu0 %vm376_vm3, %v373_v32 }
  0x3a   : > { %517 = vmatprep.mubr.f32.mxu0 %v2072_v5 }
  0x3c   : > { %754 = vperm.xlu0 %1949, %v664_v38   ;;  %759 = vperm.xlu1 %1950, %v665_v39  }
  0x3d   : > { %1792 = vmatmul.mubr.msk.f32.gmra.mrb[14].mxu0 %vm376_vm3, %v374_v35 }
  0x3e   : > { %523 = vmatprep.mubr.f32.mxu0 %v2072_v5 }
  0x40   : > { %764 = vperm.xlu0 %1949, %v666_v40   ;;  %769 = vperm.xlu1 %1950, %v667_v41  }
  0x44   : > { %774 = vperm.xlu0 %1949, %v668_v42   ;;  %779 = vperm.xlu1 %1950, %v669_v43  }
  0x48   : > { %784 = vperm.xlu0 %1949, %v670_v44   ;;  %789 = vperm.xlu1 %1950, %v671_v45  }
  0x4c   : > { %794 = vperm.xlu0 %1949, %v672_v46   ;;  %799 = vperm.xlu1 %1950, %v673_v47  }
  0x50   : > { %804 = vperm.xlu0 %1949, %v674_v48   ;;  %809 = vperm.xlu1 %1950, %v675_v49  }
  0x54   : > { %814 = vperm.xlu0 %1949, %v676_v50   ;;  %819 = vperm.xlu1 %1950, %v677_v51  }
  0x58   : > { %824 = vperm.xlu0 %1949, %v678_v52   ;;  %829 = vperm.xlu1 %1950, %v679_v53  }
  0x5c   : > { %834 = vperm.xlu0 %1949, %v680_v54   ;;  %839 = vperm.xlu1 %1950, %v681_v55  }
  0x60   : > { %1294 = vperm.xlu0 %1949, %v1276_v56   ;;  %1299 = vperm.xlu1 %1950, %v1277_v57  }
  0x64   : > { %1304 = vperm.xlu0 %1949, %v1278_v58   ;;  %1309 = vperm.xlu1 %1950, %v1279_v59  }
  0x68   : > { %1314 = vperm.xlu0 %1949, %v1280_v60   ;;  %1319 = vperm.xlu1 %1950, %v1281_v61  }
  0x6c   : > { %1324 = vperm.xlu0 %1949, %v1282_v62   ;;  %1329 = vperm.xlu1 %1950, %v1283_v63  }
  0x70   : > { %1334 = vperm.xlu0 %1949, %v1284_v0   ;;  %1339 = vperm.xlu1 %1950, %v1285_v1  }
  0x74   : > { %1344 = vperm.xlu0 %1949, %v1286_v3   ;;  %1349 = vperm.xlu1 %1950, %v1287_v4  }
  0x78   : > { %1354 = vperm.xlu0 %1949, %v1288_v6   ;;  %1359 = vperm.xlu1 %1950, %v1289_v7  }
  0x7c   : > { %1364 = vperm.xlu0 %1949, %v1290_v8   ;;  %1369 = vperm.xlu1 %1950, %v1291_v9  }
  0x80   : > { %1601 = vperm.xlu0 %1949, %v1598_v10  }
  0x8f   : > { %v541_v11 = vpop.permute.xlu0 %540  ;;  %v551_v20 = vpop.permute.xlu1 %550 }
  0x93   : > { %v546_v15 = vpop.permute.xlu0 %545  ;;  %v556_v31 = vpop.permute.xlu1 %555 }
  0x97   : > { %v561_v44 = vpop.permute.xlu0 %560  ;;  %v566_v47 = vpop.permute.xlu1 %565 }
  0x9b   : > { %v571_v60 = vpop.permute.xlu0 %570  ;;  %v576_v63 = vpop.permute.xlu1 %575 }
  0xf4   : > { %v477_v12 = vpop.f32.mrb[0].mxu0 }
  0xf5   : > { %v479_v13 = vpop.f32.mrb[1].mxu0  ;;  %v578_v14 = vadd.f32 %v541_v11, %v477_v12 }
  0xf6   : > { %v579_v16 = vadd.f32 %v541_v11, %v479_v13  ;;  %v1951_v13 = vld [vmem:[%s2590_s3] sm:$0xff]  }
  0xf7   : > { %v594_v22 = vmax.f32 %v578_v14, 0.0  ;;  %v1952_v14 = vld [vmem:[%s2590_s3 + $0x8] sm:$0xff]  }
  0xf8   : > { %v483_v17 = vpop.f32.mrb[2].mxu0  ;;  %v595_v24 = vmax.f32 %v579_v16, 0.0  ;;  %v1954_v16 = vld [vmem:[%s2590_s3 + $0x18] sm:$0xff]  }
  0xf9   : > { %v580_v18 = vadd.f32 %v546_v15, %v483_v17  ;;  %v485_v19 = vpop.f32.mrb[3].mxu0  ;;  %v1955_v17 = vld [vmem:[%s2590_s3 + $0x20] sm:$0xff]  }
  0xfa   : > { %v581_v21 = vadd.f32 %v546_v15, %v485_v19  ;;  %v1953_v15 = vld [vmem:[%s2590_s3 + $0x10] sm:$0xff]  }
  0xfb   : > { %v596_v23 = vmax.f32 %v580_v18, 0.0  ;;  %v1956_v18 = vld [vmem:[%s2590_s3 + $0x28] sm:$0xff]   ;;  %v1957_v19 = vld [vmem:[%s2590_s3 + $0x30] sm:$0xff]  }
  0xfc   : > { %v597_v25 = vmax.f32 %v581_v21, 0.0  ;;  %v489_v26 = vpop.f32.mrb[4].mxu0  ;;  %v1959_v21 = vld [vmem:[%s2590_s3 + $0x40] sm:$0xff]  }
  0xfd   : > { %v491_v27 = vpop.f32.mrb[5].mxu0  ;;  %v642_v28 = vpack.c.bf16 %v596_v23, %v594_v22  ;;  %v582_v30 = vadd.f32 %v551_v20, %v489_v26  ;;  %v1960_v22 = vld [vmem:[%s2590_s3 + $0x48] sm:$0xff]   ;;  %v1961_v23 = vld [vmem:[%s2590_s3 + $0x50] sm:$0xff]  }
  0xfe   : > { %v643_v29 = vpack.c.bf16 %v597_v25, %v595_v24  ;;  %v583_v32 = vadd.f32 %v551_v20, %v491_v27  ;;  %v1958_v20 = vld [vmem:[%s2590_s3 + $0x38] sm:$0xff]   ;;  %v1963_v25 = vld [vmem:[%s2590_s3 + $0x60] sm:$0xff]   ;;  %v1964_v26 = vld [vmem:[%s2590_s3 + $0x68] sm:$0xff]  }
  0xff   : > { %v598_v37 = vmax.f32 %v582_v30, 0.0  ;;  %v1962_v24 = vld [vmem:[%s2590_s3 + $0x58] sm:$0xff]   ;;  %v1965_v27 = vld [vmem:[%s2590_s3 + $0x70] sm:$0xff]  }
 0x100   : > { %v495_v33 = vpop.f32.mrb[6].mxu0  ;;  %971 = vmatprep.subr.bf16.mxu1 %v643_v29  ;;  %v599_v39 = vmax.f32 %v583_v32, 0.0  ;;  %v685_v29 = vpop.permute.xlu0 %684 }
 0x101   : > { %v584_v34 = vadd.f32 %v556_v31, %v495_v33  ;;  %v497_v35 = vpop.f32.mrb[7].mxu0  ;;  %972 = vmatpush1.bf16.msra.mxu1 %v642_v28  ;;  %v1966_v28 = vld [vmem:[%s2590_s3 + $0x78] sm:$0xff]  }
 0x102   : > { %v585_v36 = vadd.f32 %v556_v31, %v497_v35  ;;  %v375_v31 = vld [vmem:[%s2588_s1 + $0x40] sm:$0xf] }
 0x103   : > { %v600_v38 = vmax.f32 %v584_v34, 0.0  ;;  %1793 = vmatmul.mubr.msk.f32.gmra.mrb[16].mxu0 %vm376_vm3, %v375_v31  ;;  %v690_v34 = vpop.permute.xlu1 %689 }
 0x104   : > { %v601_v40 = vmax.f32 %v585_v36, 0.0  ;;  %v501_v41 = vpop.f32.mrb[8].mxu0 }
 0x105   : > { %v644_v42 = vpack.c.bf16 %v600_v38, %v598_v37  ;;  %v503_v43 = vpop.f32.mrb[9].mxu0  ;;  %v586_v46 = vadd.f32 %v561_v44, %v501_v41  ;;  %v1969_v38 = vld [vmem:[%s2592_s5 + $0x4] ss:$8 sps:$4 sm:$0xff]  }
 0x106   : > { %v645_v45 = vpack.c.bf16 %v601_v40, %v599_v39  ;;  %v587_v48 = vadd.f32 %v561_v44, %v503_v43  ;;  %1484 = vmatprep.mubr.bf16.mxu0 %v1969_v38 }
 0x107   : > { %v602_v53 = vmax.f32 %v586_v46, 0.0 }
 0x108   : > { %v507_v49 = vpop.f32.mrb[10].mxu0  ;;  %973 = vmatprep.subr.bf16.mxu1 %v645_v45  ;;  %v603_v55 = vmax.f32 %v587_v48, 0.0  ;;  %v695_v45 = vpop.permute.xlu0 %694 }
 0x109   : > { %v588_v50 = vadd.f32 %v566_v47, %v507_v49  ;;  %v509_v51 = vpop.f32.mrb[11].mxu0  ;;  %974 = vmatpush1.bf16.msra.mxu1 %v644_v42 }
 0x10a   : > { %v589_v52 = vadd.f32 %v566_v47, %v509_v51 }
 0x10b   : > { %v604_v54 = vmax.f32 %v588_v50, 0.0  ;;  %v700_v50 = vpop.permute.xlu1 %699 }
 0x10c   : > { %v605_v56 = vmax.f32 %v589_v52, 0.0  ;;  %v513_v57 = vpop.f32.mrb[12].mxu0 }
 0x10d   : > { %v646_v58 = vpack.c.bf16 %v604_v54, %v602_v53  ;;  %v515_v59 = vpop.f32.mrb[13].mxu0  ;;  %v590_v62 = vadd.f32 %v571_v60, %v513_v57 }
 0x10e   : > { %v647_v61 = vpack.c.bf16 %v605_v56, %v603_v55  ;;  %v591_v0 = vadd.f32 %v571_v60, %v515_v59 }
 0x10f   : > { %v606_v7 = vmax.f32 %v590_v62, 0.0 }
 0x110   : > { %v519_v1 = vpop.f32.mrb[14].mxu0  ;;  %975 = vmatprep.subr.bf16.mxu1 %v647_v61  ;;  %v607_v9 = vmax.f32 %v591_v0, 0.0  ;;  %v705_v61 = vpop.permute.xlu0 %704 }
 0x111   : > { %v592_v3 = vadd.f32 %v576_v63, %v519_v1  ;;  %v521_v4 = vpop.f32.mrb[15].mxu0  ;;  %976 = vmatpush1.bf16.msra.mxu1 %v646_v58 }
 0x112   : > { %v593_v6 = vadd.f32 %v576_v63, %v521_v4 }
 0x113   : > { %v608_v8 = vmax.f32 %v592_v3, 0.0  ;;  %v710_v3 = vpop.permute.xlu1 %709 }
 0x114   : > { %v609_v10 = vmax.f32 %v593_v6, 0.0 }
 0x115   : > { %v648_v11 = vpack.c.bf16 %v608_v8, %v606_v7 }
 0x116   : > { %v649_v12 = vpack.c.bf16 %v609_v10, %v607_v9 }
 0x118   : > { %977 = vmatprep.subr.bf16.mxu1 %v649_v12 }
 0x119   : > { %978 = vmatpush1.bf16.msra.mxu1 %v648_v11 }
 0x11c   : > { %1810 = vmatmul.mubr.msk.bf16.vlgmr.msra.gmra.mrb[0].mxu1 %vm922_vm4, %v1951_v13 }
 0x11d   : > { %1013 = vmatprep.mubr.bf16.mxu1 %v2071_v2 }
 0x124   : > { %1811 = vmatmul.mubr.msk.bf16.gmra.mrb[4].mxu1 %vm922_vm4, %v1952_v14 }
 0x125   : > { %1023 = vmatprep.mubr.bf16.mxu1 %v2071_v2 }
 0x12c   : > { %1812 = vmatmul.mubr.msk.bf16.gmra.mrb[8].mxu1 %vm922_vm4, %v1953_v15  ;;  %v715_v15 = vpop.permute.xlu0 %714 }
 0x12d   : > { %1033 = vmatprep.mubr.bf16.mxu1 %v2071_v2 }
 0x130   : > { %v725_v31 = vpop.permute.xlu0 %724 }
 0x134   : > { %1813 = vmatmul.mubr.msk.bf16.gmra.mrb[12].mxu1 %vm922_vm4, %v1954_v16 }
 0x135   : > { %1043 = vmatprep.mubr.bf16.mxu1 %v2071_v2 }
 0x13c   : > { %1814 = vmatmul.mubr.msk.bf16.gmra.mrb[16].mxu1 %vm922_vm4, %v1955_v17 }
 0x13d   : > { %1053 = vmatprep.mubr.bf16.mxu1 %v2071_v2 }
 0x144   : > { %1815 = vmatmul.mubr.msk.bf16.gmra.mrb[20].mxu1 %vm922_vm4, %v1956_v18 }
 0x145   : > { %1063 = vmatprep.mubr.bf16.mxu1 %v2071_v2 }
 0x14c   : > { %1816 = vmatmul.mubr.msk.bf16.gmra.mrb[24].mxu1 %vm922_vm4, %v1957_v19 }
 0x14d   : > { %1073 = vmatprep.mubr.bf16.mxu1 %v2071_v2 }
 0x154   : > { %1817 = vmatmul.mubr.msk.bf16.gmra.mrb[28].mxu1 %vm922_vm4, %v1958_v20  ;;  %v720_v20 = vpop.permute.xlu1 %719 }
 0x155   : > { %1083 = vmatprep.mubr.bf16.mxu1 %v2071_v2 }
 0x15c   : > { %1818 = vmatmul.mubr.msk.bf16.gmra.mrb[32].mxu1 %vm922_vm4, %v1959_v21 }
 0x15d   : > { %1093 = vmatprep.mubr.bf16.mxu1 %v2071_v2 }
 0x164   : > { %1819 = vmatmul.mubr.msk.bf16.gmra.mrb[36].mxu1 %vm922_vm4, %v1960_v22 }
 0x165   : > { %1103 = vmatprep.mubr.bf16.mxu1 %v2071_v2 }
 0x16c   : > { %1820 = vmatmul.mubr.msk.bf16.gmra.mrb[40].mxu1 %vm922_vm4, %v1961_v23 }
 0x16d   : > { %1113 = vmatprep.mubr.bf16.mxu1 %v2071_v2 }
 0x174   : > { %1821 = vmatmul.mubr.msk.bf16.gmra.mrb[44].mxu1 %vm922_vm4, %v1962_v24 }
 0x175   : > { %1123 = vmatprep.mubr.bf16.mxu1 %v2071_v2 }
 0x17c   : > { %1822 = vmatmul.mubr.msk.bf16.gmra.mrb[48].mxu1 %vm922_vm4, %v1963_v25 }
 0x17d   : > { %1133 = vmatprep.mubr.bf16.mxu1 %v2071_v2 }
 0x184   : > { %1823 = vmatmul.mubr.msk.bf16.gmra.mrb[52].mxu1 %vm922_vm4, %v1964_v26 }
 0x185   : > { %1143 = vmatprep.mubr.bf16.mxu1 %v2071_v2 }
 0x18c   : > { %1824 = vmatmul.mubr.msk.bf16.gmra.mrb[56].mxu1 %vm922_vm4, %v1965_v27 }
 0x18d   : > { %1153 = vmatprep.mubr.bf16.mxu1 %v2071_v2 }
 0x194   : > { %1825 = vmatmul.mubr.msk.bf16.gmra.mrb[60].mxu1 %vm922_vm4, %v1966_v28 }
 0x1ef   : > { %v1005_v30 = vpop.f32.mrb[0].mxu1 }
 0x1f0   : > { %v1006_v32 = vadd.f32 %v1005_v30, %v685_v29  ;;  %v1007_v33 = vpop.f32.mrb[1].mxu1 }
 0x1f1   : > { %v1008_v35 = vadd.f32 %v1007_v33, %v685_v29  ;;  %v1009_v36 = vpop.f32.mrb[2].mxu1 }
 0x1f2   : > { %v1010_v2 = vadd.f32 %v1009_v36, %v690_v34  ;;  %v1011_v37 = vpop.f32.mrb[3].mxu1  ;;  %v1164_v40 = vmax.f32 %v1006_v32, 0.0  ;;  %v730_v36 = vpop.permute.xlu1 %729 }
 0x1f3   : > { %v1012_v39 = vadd.f32 %v1011_v37, %v690_v34  ;;  %v1165_v42 = vmax.f32 %v1008_v35, 0.0 }
 0x1f4   : > { %v1166_v41 = vmax.f32 %v1010_v2, 0.0 }
 0x1f5   : > { %v1167_v43 = vmax.f32 %v1012_v39, 0.0 }
 0x1f6   : > { %v1244_v44 = vpack.c.bf16 %v1166_v41, %v1164_v40 }
 0x1f7   : > { %v1245_v46 = vpack.c.bf16 %v1167_v43, %v1165_v42  ;;  %v1015_v47 = vpop.f32.mrb[4].mxu1 }
 0x1f8   : > { %v1016_v48 = vadd.f32 %v1015_v47, %v695_v45  ;;  %v1017_v49 = vpop.f32.mrb[5].mxu1 }
 0x1f9   : > { %v1018_v51 = vadd.f32 %v1017_v49, %v695_v45  ;;  %v1019_v52 = vpop.f32.mrb[6].mxu1  ;;  %1452 = vmatprep.subr.bf16.mxu0 %v1245_v46  ;;  %v735_v46 = vpop.permute.xlu0 %734 }
 0x1fa   : > { %v1020_v53 = vadd.f32 %v1019_v52, %v700_v50  ;;  %v1021_v54 = vpop.f32.mrb[7].mxu1  ;;  %1453 = vmatpush1.bf16.msra.mxu0 %v1244_v44  ;;  %v1168_v56 = vmax.f32 %v1016_v48, 0.0 }
 0x1fb   : > { %v1022_v55 = vadd.f32 %v1021_v54, %v700_v50  ;;  %v1169_v58 = vmax.f32 %v1018_v51, 0.0  ;;  %v740_v51 = vpop.permute.xlu1 %739 }
 0x1fc   : > { %v1170_v57 = vmax.f32 %v1020_v53, 0.0 }
 0x1fd   : > { %v1171_v59 = vmax.f32 %v1022_v55, 0.0 }
 0x1fe   : > { %v1246_v60 = vpack.c.bf16 %v1170_v57, %v1168_v56 }
 0x1ff   : > { %v1247_v62 = vpack.c.bf16 %v1171_v59, %v1169_v58  ;;  %v1025_v63 = vpop.f32.mrb[8].mxu1 }
 0x200   : > { %v1026_v0 = vadd.f32 %v1025_v63, %v705_v61  ;;  %v1027_v1 = vpop.f32.mrb[9].mxu1 }
 0x201   : > { %v1028_v4 = vadd.f32 %v1027_v1, %v705_v61  ;;  %v1029_v6 = vpop.f32.mrb[10].mxu1  ;;  %1454 = vmatprep.subr.bf16.mxu0 %v1247_v62  ;;  %v745_v62 = vpop.permute.xlu0 %744 }
 0x202   : > { %v1030_v7 = vadd.f32 %v1029_v6, %v710_v3  ;;  %v1031_v8 = vpop.f32.mrb[11].mxu1  ;;  %1455 = vmatpush1.bf16.msra.mxu0 %v1246_v60  ;;  %v1172_v10 = vmax.f32 %v1026_v0, 0.0 }
 0x203   : > { %v1032_v9 = vadd.f32 %v1031_v8, %v710_v3  ;;  %v1173_v12 = vmax.f32 %v1028_v4, 0.0  ;;  %v750_v4 = vpop.permute.xlu1 %749 }
 0x204   : > { %v1174_v11 = vmax.f32 %v1030_v7, 0.0 }
 0x205   : > { %v1175_v13 = vmax.f32 %v1032_v9, 0.0 }
 0x206   : > { %v1248_v14 = vpack.c.bf16 %v1174_v11, %v1172_v10 }
 0x207   : > { %v1249_v16 = vpack.c.bf16 %v1175_v13, %v1173_v12  ;;  %v1035_v17 = vpop.f32.mrb[12].mxu1 }
 0x208   : > { %v1036_v18 = vadd.f32 %v1035_v17, %v715_v15  ;;  %v1037_v19 = vpop.f32.mrb[13].mxu1 }
 0x209   : > { %v1038_v21 = vadd.f32 %v1037_v19, %v715_v15  ;;  %v1039_v22 = vpop.f32.mrb[14].mxu1  ;;  %1456 = vmatprep.subr.bf16.mxu0 %v1249_v16  ;;  %v755_v16 = vpop.permute.xlu0 %754 }
 0x20a   : > { %v1040_v23 = vadd.f32 %v1039_v22, %v720_v20  ;;  %v1041_v24 = vpop.f32.mrb[15].mxu1  ;;  %1457 = vmatpush1.bf16.msra.mxu0 %v1248_v14  ;;  %v1176_v26 = vmax.f32 %v1036_v18, 0.0 }
 0x20b   : > { %v1042_v25 = vadd.f32 %v1041_v24, %v720_v20  ;;  %v1177_v28 = vmax.f32 %v1038_v21, 0.0  ;;  %v760_v21 = vpop.permute.xlu1 %759 }
 0x20c   : > { %v1178_v27 = vmax.f32 %v1040_v23, 0.0 }
 0x20d   : > { %v1179_v29 = vmax.f32 %v1042_v25, 0.0 }
 0x20e   : > { %v1250_v30 = vpack.c.bf16 %v1178_v27, %v1176_v26 }
 0x20f   : > { %v1251_v32 = vpack.c.bf16 %v1179_v29, %v1177_v28  ;;  %v1045_v33 = vpop.f32.mrb[16].mxu1 }
 0x210   : > { %v1046_v34 = vadd.f32 %v1045_v33, %v725_v31  ;;  %v1047_v35 = vpop.f32.mrb[17].mxu1 }
 0x211   : > { %v1048_v2 = vadd.f32 %v1047_v35, %v725_v31  ;;  %v1049_v37 = vpop.f32.mrb[18].mxu1  ;;  %1458 = vmatprep.subr.bf16.mxu0 %v1251_v32  ;;  %v765_v32 = vpop.permute.xlu0 %764 }
 0x212   : > { %v1050_v38 = vadd.f32 %v1049_v37, %v730_v36  ;;  %v1051_v39 = vpop.f32.mrb[19].mxu1  ;;  %1459 = vmatpush1.bf16.msra.mxu0 %v1250_v30  ;;  %v1180_v41 = vmax.f32 %v1046_v34, 0.0 }
 0x213   : > { %v1052_v40 = vadd.f32 %v1051_v39, %v730_v36  ;;  %v1181_v43 = vmax.f32 %v1048_v2, 0.0  ;;  %v770_v2 = vpop.permute.xlu1 %769 }
 0x214   : > { %v1182_v42 = vmax.f32 %v1050_v38, 0.0 }
 0x215   : > { %v1183_v44 = vmax.f32 %v1052_v40, 0.0 }
 0x216   : > { %v1252_v45 = vpack.c.bf16 %v1182_v42, %v1180_v41 }
 0x217   : > { %v1253_v47 = vpack.c.bf16 %v1183_v44, %v1181_v43  ;;  %v1055_v48 = vpop.f32.mrb[20].mxu1 }
 0x218   : > { %v1056_v49 = vadd.f32 %v1055_v48, %v735_v46  ;;  %v1057_v50 = vpop.f32.mrb[21].mxu1 }
 0x219   : > { %v1058_v52 = vadd.f32 %v1057_v50, %v735_v46  ;;  %v1059_v53 = vpop.f32.mrb[22].mxu1  ;;  %1460 = vmatprep.subr.bf16.mxu0 %v1253_v47  ;;  %v775_v47 = vpop.permute.xlu0 %774 }
 0x21a   : > { %v1060_v54 = vadd.f32 %v1059_v53, %v740_v51  ;;  %v1061_v55 = vpop.f32.mrb[23].mxu1  ;;  %1461 = vmatpush1.bf16.msra.mxu0 %v1252_v45  ;;  %v1184_v57 = vmax.f32 %v1056_v49, 0.0 }
 0x21b   : > { %v1062_v56 = vadd.f32 %v1061_v55, %v740_v51  ;;  %v1185_v59 = vmax.f32 %v1058_v52, 0.0  ;;  %v780_v52 = vpop.permute.xlu1 %779 }
 0x21c   : > { %v1186_v58 = vmax.f32 %v1060_v54, 0.0 }
 0x21d   : > { %v1187_v60 = vmax.f32 %v1062_v56, 0.0 }
 0x21e   : > { %v1254_v61 = vpack.c.bf16 %v1186_v58, %v1184_v57 }
 0x21f   : > { %v1255_v63 = vpack.c.bf16 %v1187_v60, %v1185_v59  ;;  %v1065_v0 = vpop.f32.mrb[24].mxu1 }
 0x220   : > { %v1066_v1 = vadd.f32 %v1065_v0, %v745_v62  ;;  %v1067_v3 = vpop.f32.mrb[25].mxu1 }
 0x221   : > { %v1068_v6 = vadd.f32 %v1067_v3, %v745_v62  ;;  %v1069_v7 = vpop.f32.mrb[26].mxu1  ;;  %1462 = vmatprep.subr.bf16.mxu0 %v1255_v63  ;;  %v785_v63 = vpop.permute.xlu0 %784 }
 0x222   : > { %v1070_v8 = vadd.f32 %v1069_v7, %v750_v4  ;;  %v1071_v9 = vpop.f32.mrb[27].mxu1  ;;  %1463 = vmatpush1.bf16.msra.mxu0 %v1254_v61  ;;  %v1188_v11 = vmax.f32 %v1066_v1, 0.0 }
 0x223   : > { %v1072_v10 = vadd.f32 %v1071_v9, %v750_v4  ;;  %v1189_v13 = vmax.f32 %v1068_v6, 0.0  ;;  %v790_v6 = vpop.permute.xlu1 %789 }
 0x224   : > { %v1190_v12 = vmax.f32 %v1070_v8, 0.0 }
 0x225   : > { %v1191_v14 = vmax.f32 %v1072_v10, 0.0 }
 0x226   : > { %v1256_v15 = vpack.c.bf16 %v1190_v12, %v1188_v11 }
 0x227   : > { %v1257_v17 = vpack.c.bf16 %v1191_v14, %v1189_v13  ;;  %v1075_v18 = vpop.f32.mrb[28].mxu1 }
 0x228   : > { %v1076_v19 = vadd.f32 %v1075_v18, %v755_v16  ;;  %v1077_v20 = vpop.f32.mrb[29].mxu1 }
 0x229   : > { %v1078_v22 = vadd.f32 %v1077_v20, %v755_v16  ;;  %v1079_v23 = vpop.f32.mrb[30].mxu1  ;;  %1464 = vmatprep.subr.bf16.mxu0 %v1257_v17  ;;  %v795_v17 = vpop.permute.xlu0 %794 }
 0x22a   : > { %v1080_v24 = vadd.f32 %v1079_v23, %v760_v21  ;;  %v1081_v25 = vpop.f32.mrb[31].mxu1  ;;  %1465 = vmatpush1.bf16.msra.mxu0 %v1256_v15  ;;  %v1192_v27 = vmax.f32 %v1076_v19, 0.0 }
 0x22b   : > { %v1082_v26 = vadd.f32 %v1081_v25, %v760_v21  ;;  %v1193_v29 = vmax.f32 %v1078_v22, 0.0  ;;  %v800_v22 = vpop.permute.xlu1 %799 }
 0x22c   : > { %v1194_v28 = vmax.f32 %v1080_v24, 0.0 }
 0x22d   : > { %v1195_v30 = vmax.f32 %v1082_v26, 0.0 }
 0x22e   : > { %v1258_v31 = vpack.c.bf16 %v1194_v28, %v1192_v27 }
 0x22f   : > { %v1259_v33 = vpack.c.bf16 %v1195_v30, %v1193_v29  ;;  %v1085_v34 = vpop.f32.mrb[32].mxu1 }
 0x230   : > { %v1086_v35 = vadd.f32 %v1085_v34, %v765_v32  ;;  %v1087_v36 = vpop.f32.mrb[33].mxu1 }
 0x231   : > { %v1088_v37 = vadd.f32 %v1087_v36, %v765_v32  ;;  %v1089_v38 = vpop.f32.mrb[34].mxu1  ;;  %1466 = vmatprep.subr.bf16.mxu0 %v1259_v33  ;;  %v805_v33 = vpop.permute.xlu0 %804 }
 0x232   : > { %v1090_v39 = vadd.f32 %v1089_v38, %v770_v2  ;;  %v1091_v40 = vpop.f32.mrb[35].mxu1  ;;  %1467 = vmatpush1.bf16.msra.mxu0 %v1258_v31  ;;  %v1196_v42 = vmax.f32 %v1086_v35, 0.0 }
 0x233   : > { %v1092_v41 = vadd.f32 %v1091_v40, %v770_v2  ;;  %v1197_v44 = vmax.f32 %v1088_v37, 0.0  ;;  %v810_v37 = vpop.permute.xlu1 %809 }
 0x234   : > { %v1198_v43 = vmax.f32 %v1090_v39, 0.0 }
 0x235   : > { %v1199_v45 = vmax.f32 %v1092_v41, 0.0 }
 0x236   : > { %v1260_v46 = vpack.c.bf16 %v1198_v43, %v1196_v42 }
 0x237   : > { %v1261_v48 = vpack.c.bf16 %v1199_v45, %v1197_v44  ;;  %v1095_v49 = vpop.f32.mrb[36].mxu1 }
 0x238   : > { %v1096_v50 = vadd.f32 %v1095_v49, %v775_v47  ;;  %v1097_v51 = vpop.f32.mrb[37].mxu1 }
 0x239   : > { %v1098_v53 = vadd.f32 %v1097_v51, %v775_v47  ;;  %v1099_v54 = vpop.f32.mrb[38].mxu1  ;;  %1468 = vmatprep.subr.bf16.mxu0 %v1261_v48  ;;  %v815_v48 = vpop.permute.xlu0 %814 }
 0x23a   : > { %v1100_v55 = vadd.f32 %v1099_v54, %v780_v52  ;;  %v1101_v56 = vpop.f32.mrb[39].mxu1  ;;  %1469 = vmatpush1.bf16.msra.mxu0 %v1260_v46  ;;  %v1200_v58 = vmax.f32 %v1096_v50, 0.0 }
 0x23b   : > { %v1102_v57 = vadd.f32 %v1101_v56, %v780_v52  ;;  %v1201_v60 = vmax.f32 %v1098_v53, 0.0  ;;  %v820_v53 = vpop.permute.xlu1 %819 }
 0x23c   : > { %v1202_v59 = vmax.f32 %v1100_v55, 0.0 }
 0x23d   : > { %v1203_v61 = vmax.f32 %v1102_v57, 0.0 }
 0x23e   : > { %v1262_v62 = vpack.c.bf16 %v1202_v59, %v1200_v58 }
 0x23f   : > { %v1263_v0 = vpack.c.bf16 %v1203_v61, %v1201_v60  ;;  %v1105_v1 = vpop.f32.mrb[40].mxu1 }
 0x240   : > { %v1106_v3 = vadd.f32 %v1105_v1, %v785_v63  ;;  %v1107_v4 = vpop.f32.mrb[41].mxu1 }
 0x241   : > { %v1108_v7 = vadd.f32 %v1107_v4, %v785_v63  ;;  %v1109_v8 = vpop.f32.mrb[42].mxu1  ;;  %1470 = vmatprep.subr.bf16.mxu0 %v1263_v0  ;;  %v825_v0 = vpop.permute.xlu0 %824 }
 0x242   : > { %v1110_v9 = vadd.f32 %v1109_v8, %v790_v6  ;;  %v1111_v10 = vpop.f32.mrb[43].mxu1  ;;  %1471 = vmatpush1.bf16.msra.mxu0 %v1262_v62  ;;  %v1204_v12 = vmax.f32 %v1106_v3, 0.0 }
 0x243   : > { %v1112_v11 = vadd.f32 %v1111_v10, %v790_v6  ;;  %v1205_v14 = vmax.f32 %v1108_v7, 0.0  ;;  %v830_v7 = vpop.permute.xlu1 %829 }
 0x244   : > { %v1206_v13 = vmax.f32 %v1110_v9, 0.0 }
 0x245   : > { %v1207_v15 = vmax.f32 %v1112_v11, 0.0 }
 0x246   : > { %v1264_v16 = vpack.c.bf16 %v1206_v13, %v1204_v12 }
 0x247   : > { %v1265_v18 = vpack.c.bf16 %v1207_v15, %v1205_v14  ;;  %v1115_v19 = vpop.f32.mrb[44].mxu1 }
 0x248   : > { %v1116_v20 = vadd.f32 %v1115_v19, %v795_v17  ;;  %v1117_v21 = vpop.f32.mrb[45].mxu1 }
 0x249   : > { %v1118_v23 = vadd.f32 %v1117_v21, %v795_v17  ;;  %v1119_v24 = vpop.f32.mrb[46].mxu1  ;;  %1472 = vmatprep.subr.bf16.mxu0 %v1265_v18  ;;  %v835_v18 = vpop.permute.xlu0 %834 }
 0x24a   : > { %v1120_v25 = vadd.f32 %v1119_v24, %v800_v22  ;;  %v1121_v26 = vpop.f32.mrb[47].mxu1  ;;  %1473 = vmatpush1.bf16.msra.mxu0 %v1264_v16  ;;  %v1208_v28 = vmax.f32 %v1116_v20, 0.0 }
 0x24b   : > { %v1122_v27 = vadd.f32 %v1121_v26, %v800_v22  ;;  %v1209_v30 = vmax.f32 %v1118_v23, 0.0  ;;  %v840_v23 = vpop.permute.xlu1 %839 }
 0x24c   : > { %v1210_v29 = vmax.f32 %v1120_v25, 0.0 }
 0x24d   : > { %v1211_v31 = vmax.f32 %v1122_v27, 0.0 }
 0x24e   : > { %v1266_v32 = vpack.c.bf16 %v1210_v29, %v1208_v28 }
 0x24f   : > { %v1267_v34 = vpack.c.bf16 %v1211_v31, %v1209_v30  ;;  %v1125_v35 = vpop.f32.mrb[48].mxu1 }
 0x250   : > { %v1126_v36 = vadd.f32 %v1125_v35, %v805_v33  ;;  %v1127_v2 = vpop.f32.mrb[49].mxu1  ;;  %v1967_v35 = vld [vmem:[%s2592_s5] ss:$8 sps:$4 sm:$0xff]  }
 0x251   : > { %v1128_v38 = vadd.f32 %v1127_v2, %v805_v33  ;;  %v1129_v39 = vpop.f32.mrb[50].mxu1  ;;  %1474 = vmatprep.subr.bf16.mxu0 %v1267_v34  ;;  %v1972_v2 = vld [vmem:[%s2592_s5 + $0x10] ss:$8 sps:$4 sm:$0xff]  }
 0x252   : > { %v1130_v40 = vadd.f32 %v1129_v39, %v810_v37  ;;  %v1131_v41 = vpop.f32.mrb[51].mxu1  ;;  %1475 = vmatpush1.bf16.msra.mxu0 %v1266_v32  ;;  %v1212_v43 = vmax.f32 %v1126_v36, 0.0  ;;  %v1970_v36 = vld [vmem:[%s2592_s5 + $0x14] ss:$8 sps:$4 sm:$0xff]  }
 0x253   : > { %v1132_v42 = vadd.f32 %v1131_v41, %v810_v37  ;;  %v1213_v45 = vmax.f32 %v1128_v38, 0.0  ;;  %v1973_v37 = vld [vmem:[%s2592_s5 + $0x24] ss:$8 sps:$4 sm:$0xff]   ;;  %v1975_v38 = vld [vmem:[%s2592_s5 + $0x20] ss:$8 sps:$4 sm:$0xff]  }
 0x254   : > { %v1214_v44 = vmax.f32 %v1130_v40, 0.0  ;;  %v1976_v39 = vld [vmem:[%s2592_s5 + $0x34] ss:$8 sps:$4 sm:$0xff]   ;;  %v1978_v40 = vld [vmem:[%s2592_s5 + $0x30] ss:$8 sps:$4 sm:$0xff]  }
 0x255   : > { %v1215_v46 = vmax.f32 %v1132_v42, 0.0  ;;  %v1979_v41 = vld [vmem:[%s2592_s5 + $0x44] ss:$8 sps:$4 sm:$0xff]   ;;  %v1981_v42 = vld [vmem:[%s2592_s5 + $0x40] ss:$8 sps:$4 sm:$0xff]  }
 0x256   : > { %v1268_v47 = vpack.c.bf16 %v1214_v44, %v1212_v43  ;;  %v1982_v43 = vld [vmem:[%s2592_s5 + $0x54] ss:$8 sps:$4 sm:$0xff]   ;;  %v1984_v44 = vld [vmem:[%s2592_s5 + $0x50] ss:$8 sps:$4 sm:$0xff]  }
 0x257   : > { %v1269_v49 = vpack.c.bf16 %v1215_v46, %v1213_v45  ;;  %v1135_v50 = vpop.f32.mrb[52].mxu1  ;;  %v1985_v45 = vld [vmem:[%s2592_s5 + $0x64] ss:$8 sps:$4 sm:$0xff]   ;;  %v1987_v46 = vld [vmem:[%s2592_s5 + $0x60] ss:$8 sps:$4 sm:$0xff]  }
 0x258   : > { %v1136_v51 = vadd.f32 %v1135_v50, %v815_v48  ;;  %v1137_v52 = vpop.f32.mrb[53].mxu1 }
 0x259   : > { %v1138_v54 = vadd.f32 %v1137_v52, %v815_v48  ;;  %v1139_v55 = vpop.f32.mrb[54].mxu1  ;;  %1476 = vmatprep.subr.bf16.mxu0 %v1269_v49  ;;  %v1990_v48 = vld [vmem:[%s2592_s5 + $0x70] ss:$8 sps:$4 sm:$0xff]   ;;  %v1295_v49 = vpop.permute.xlu0 %1294 }
 0x25a   : > { %v1140_v56 = vadd.f32 %v1139_v55, %v820_v53  ;;  %v1141_v57 = vpop.f32.mrb[55].mxu1  ;;  %1477 = vmatpush1.bf16.msra.mxu0 %v1268_v47  ;;  %v1216_v59 = vmax.f32 %v1136_v51, 0.0  ;;  %v1988_v47 = vld [vmem:[%s2592_s5 + $0x74] ss:$8 sps:$4 sm:$0xff]  }
 0x25b   : > { %v1142_v58 = vadd.f32 %v1141_v57, %v820_v53  ;;  %v1217_v61 = vmax.f32 %v1138_v54, 0.0  ;;  %v1300_v53 = vpop.permute.xlu1 %1299 }
 0x25c   : > { %v1218_v60 = vmax.f32 %v1140_v56, 0.0 }
 0x25d   : > { %v1219_v62 = vmax.f32 %v1142_v58, 0.0 }
 0x25e   : > { %v1270_v63 = vpack.c.bf16 %v1218_v60, %v1216_v59 }
 0x25f   : > { %v1271_v1 = vpack.c.bf16 %v1219_v62, %v1217_v61  ;;  %v1145_v3 = vpop.f32.mrb[56].mxu1 }
 0x260   : > { %v1146_v4 = vadd.f32 %v1145_v3, %v825_v0  ;;  %v1147_v6 = vpop.f32.mrb[57].mxu1 }
 0x261   : > { %v1148_v8 = vadd.f32 %v1147_v6, %v825_v0  ;;  %v1149_v9 = vpop.f32.mrb[58].mxu1  ;;  %1478 = vmatprep.subr.bf16.mxu0 %v1271_v1  ;;  %v1305_v0 = vpop.permute.xlu0 %1304 }
 0x262   : > { %v1150_v10 = vadd.f32 %v1149_v9, %v830_v7  ;;  %v1151_v11 = vpop.f32.mrb[59].mxu1  ;;  %1479 = vmatpush1.bf16.msra.mxu0 %v1270_v63  ;;  %v1220_v13 = vmax.f32 %v1146_v4, 0.0  ;;  %v1310_v6 = vpop.permute.xlu1 %1309 }
 0x263   : > { %v1152_v12 = vadd.f32 %v1151_v11, %v830_v7  ;;  %v1221_v15 = vmax.f32 %v1148_v8, 0.0 }
 0x264   : > { %v1222_v14 = vmax.f32 %v1150_v10, 0.0 }
 0x265   : > { %v1223_v16 = vmax.f32 %v1152_v12, 0.0 }
 0x266   : > { %v1272_v17 = vpack.c.bf16 %v1222_v14, %v1220_v13 }
 0x267   : > { %v1273_v19 = vpack.c.bf16 %v1223_v16, %v1221_v15  ;;  %v1155_v20 = vpop.f32.mrb[60].mxu1 }
 0x268   : > { %v1156_v21 = vadd.f32 %v1155_v20, %v835_v18  ;;  %v1157_v22 = vpop.f32.mrb[61].mxu1 }
 0x269   : > { %v1158_v24 = vadd.f32 %v1157_v22, %v835_v18  ;;  %v1159_v25 = vpop.f32.mrb[62].mxu1  ;;  %1480 = vmatprep.subr.bf16.mxu0 %v1273_v19  ;;  %v1320_v22 = vpop.permute.xlu1 %1319 }
 0x26a   : > { %v1160_v26 = vadd.f32 %v1159_v25, %v840_v23  ;;  %v1161_v27 = vpop.f32.mrb[63].mxu1  ;;  %1481 = vmatpush1.bf16.msra.mxu0 %v1272_v17  ;;  %v1224_v29 = vmax.f32 %v1156_v21, 0.0  ;;  %v1315_v17 = vpop.permute.xlu0 %1314 }
 0x26b   : > { %v1162_v28 = vadd.f32 %v1161_v27, %v840_v23  ;;  %v1225_v31 = vmax.f32 %v1158_v24, 0.0 }
 0x26c   : > { %v1226_v30 = vmax.f32 %v1160_v26, 0.0 }
 0x26d   : > { %v1227_v32 = vmax.f32 %v1162_v28, 0.0 }
 0x26e   : > { %v1274_v33 = vpack.c.bf16 %v1226_v30, %v1224_v29 }
 0x26f   : > { %v1275_v34 = vpack.c.bf16 %v1227_v32, %v1225_v31 }
 0x271   : > { %1482 = vmatprep.subr.bf16.mxu0 %v1275_v34 }
 0x272   : > { %1483 = vmatpush1.bf16.msra.mxu0 %v1274_v33  ;;  %v1325_v33 = vpop.permute.xlu0 %1324 }
 0x275   : > { %1485 = vmatmul.mubr.bf16.vlgmr.msra.gmra.mrb[20].mxu0 %v1967_v35 }
 0x276   : > { %1494 = vmatprep.mubr.bf16.mxu0 %v1970_v36 }
 0x27d   : > { %1495 = vmatmul.mubr.bf16.gmra.mrb[24].mxu0 %v1972_v2 }
 0x27e   : > { %1504 = vmatprep.mubr.bf16.mxu0 %v1973_v37  ;;  %v1330_v37 = vpop.permute.xlu1 %1329 }
 0x285   : > { %1505 = vmatmul.mubr.bf16.gmra.mrb[28].mxu0 %v1975_v38 }
 0x286   : > { %1514 = vmatprep.mubr.bf16.mxu0 %v1976_v39 }
 0x28d   : > { %1515 = vmatmul.mubr.bf16.gmra.mrb[32].mxu0 %v1978_v40 }
 0x28e   : > { %1524 = vmatprep.mubr.bf16.mxu0 %v1979_v41 }
 0x295   : > { %1525 = vmatmul.mubr.bf16.gmra.mrb[36].mxu0 %v1981_v42 }
 0x296   : > { %1534 = vmatprep.mubr.bf16.mxu0 %v1982_v43 }
 0x29d   : > { %1535 = vmatmul.mubr.bf16.gmra.mrb[40].mxu0 %v1984_v44 }
 0x29e   : > { %1544 = vmatprep.mubr.bf16.mxu0 %v1985_v45 }
 0x2a5   : > { %1545 = vmatmul.mubr.bf16.gmra.mrb[44].mxu0 %v1987_v46 }
 0x2a6   : > { %1554 = vmatprep.mubr.bf16.mxu0 %v1988_v47 }
 0x2ad   : > { %1555 = vmatmul.mubr.bf16.gmra.mrb[48].mxu0 %v1990_v48  ;;  %v1335_v48 = vpop.permute.xlu0 %1334 }
 0x2ae   : > { %1668 = vmatprep.mubr.f32.mxu0 %v2072_v5 }
 0x348   : > { %v1486_v50 = vpop.f32.mrb[20].mxu0 }
 0x349   : > { %v1487_v51 = vadd.f32 %v1486_v50, %v1295_v49  ;;  %v1488_v52 = vpop.f32.mrb[21].mxu0 }
 0x34a   : > { %v1489_v54 = vadd.f32 %v1488_v52, %v1295_v49  ;;  %v1490_v55 = vpop.f32.mrb[22].mxu0 }
 0x34b   : > { %v1491_v56 = vadd.f32 %v1490_v55, %v1300_v53  ;;  %v1492_v57 = vpop.f32.mrb[23].mxu0  ;;  %v1565_v59 = vmax.f32 %v1487_v51, 0.0 }
 0x34c   : > { %v1493_v58 = vadd.f32 %v1492_v57, %v1300_v53  ;;  %v1566_v61 = vmax.f32 %v1489_v54, 0.0  ;;  %v1340_v53 = vpop.permute.xlu1 %1339 }
 0x34d   : > { %v1567_v60 = vmax.f32 %v1491_v56, 0.0 }
 0x34e   : > { %v1568_v62 = vmax.f32 %v1493_v58, 0.0 }
 0x34f   : > { %v1857_v63 = vpack.c.bf16 %v1567_v60, %v1565_v59 }
 0x350   : > { %v1855_v1 = vpack.c.bf16 %v1568_v62, %v1566_v61  ;;  %v1496_v3 = vpop.f32.mrb[24].mxu0 }
 0x351   : > { %v1497_v4 = vadd.f32 %v1496_v3, %v1305_v0  ;;  %v1498_v5 = vpop.f32.mrb[25].mxu0 }
 0x352   : > { %v1499_v7 = vadd.f32 %v1498_v5, %v1305_v0  ;;  %v1500_v8 = vpop.f32.mrb[26].mxu0  ;;  %1856 = vmatprep.subr.bf16.mxu0 %v1855_v1  ;;  %v1345_v0 = vpop.permute.xlu0 %1344 }
 0x353   : > { %v1501_v9 = vadd.f32 %v1500_v8, %v1310_v6  ;;  %v1502_v10 = vpop.f32.mrb[27].mxu0  ;;  %1858 = vmatpush1.bf16.msra.mxu0 %v1857_v63  ;;  %v1569_v12 = vmax.f32 %v1497_v4, 0.0 }
 0x354   : > { %v1503_v11 = vadd.f32 %v1502_v10, %v1310_v6  ;;  %v1570_v14 = vmax.f32 %v1499_v7, 0.0  ;;  %v1350_v6 = vpop.permute.xlu1 %1349 }
 0x355   : > { %v1571_v13 = vmax.f32 %v1501_v9, 0.0 }
 0x356   : > { %v1572_v15 = vmax.f32 %v1503_v11, 0.0 }
 0x357   : > { %v1861_v16 = vpack.c.bf16 %v1571_v13, %v1569_v12 }
 0x358   : > { %v1859_v18 = vpack.c.bf16 %v1572_v15, %v1570_v14  ;;  %v1506_v19 = vpop.f32.mrb[28].mxu0 }
 0x359   : > { %v1507_v20 = vadd.f32 %v1506_v19, %v1315_v17  ;;  %v1508_v21 = vpop.f32.mrb[29].mxu0 }
 0x35a   : > { %v1509_v23 = vadd.f32 %v1508_v21, %v1315_v17  ;;  %v1510_v24 = vpop.f32.mrb[30].mxu0  ;;  %1860 = vmatprep.subr.bf16.mxu0 %v1859_v18  ;;  %v1355_v17 = vpop.permute.xlu0 %1354 }
 0x35b   : > { %v1511_v25 = vadd.f32 %v1510_v24, %v1320_v22  ;;  %v1512_v26 = vpop.f32.mrb[31].mxu0  ;;  %1862 = vmatpush1.bf16.msra.mxu0 %v1861_v16  ;;  %v1573_v28 = vmax.f32 %v1507_v20, 0.0 }
 0x35c   : > { %v1513_v27 = vadd.f32 %v1512_v26, %v1320_v22  ;;  %v1574_v30 = vmax.f32 %v1509_v23, 0.0  ;;  %v1360_v22 = vpop.permute.xlu1 %1359 }
 0x35d   : > { %v1575_v29 = vmax.f32 %v1511_v25, 0.0 }
 0x35e   : > { %v1576_v31 = vmax.f32 %v1513_v27, 0.0 }
 0x35f   : > { %v1865_v32 = vpack.c.bf16 %v1575_v29, %v1573_v28 }
 0x360   : > { %v1863_v34 = vpack.c.bf16 %v1576_v31, %v1574_v30  ;;  %v1516_v35 = vpop.f32.mrb[32].mxu0 }
 0x361   : > { %v1517_v36 = vadd.f32 %v1516_v35, %v1325_v33  ;;  %v1518_v2 = vpop.f32.mrb[33].mxu0 }
 0x362   : > { %v1519_v38 = vadd.f32 %v1518_v2, %v1325_v33  ;;  %v1520_v39 = vpop.f32.mrb[34].mxu0  ;;  %1864 = vmatprep.subr.bf16.mxu0 %v1863_v34  ;;  %v1365_v33 = vpop.permute.xlu0 %1364 }
 0x363   : > { %v1521_v40 = vadd.f32 %v1520_v39, %v1330_v37  ;;  %v1522_v41 = vpop.f32.mrb[35].mxu0  ;;  %1866 = vmatpush1.bf16.msra.mxu0 %v1865_v32  ;;  %v1577_v43 = vmax.f32 %v1517_v36, 0.0 }
 0x364   : > { %v1523_v42 = vadd.f32 %v1522_v41, %v1330_v37  ;;  %v1578_v45 = vmax.f32 %v1519_v38, 0.0  ;;  %v1370_v37 = vpop.permute.xlu1 %1369 }
 0x365   : > { %v1579_v44 = vmax.f32 %v1521_v40, 0.0 }
 0x366   : > { %v1580_v46 = vmax.f32 %v1523_v42, 0.0 }
 0x367   : > { %v1869_v47 = vpack.c.bf16 %v1579_v44, %v1577_v43 }
 0x368   : > { %v1867_v49 = vpack.c.bf16 %v1580_v46, %v1578_v45  ;;  %v1526_v50 = vpop.f32.mrb[36].mxu0 }
 0x369   : > { %v1527_v51 = vadd.f32 %v1526_v50, %v1335_v48  ;;  %v1528_v52 = vpop.f32.mrb[37].mxu0  ;;  %v1602_v50 = vpop.permute.xlu0 %1601 }
 0x36a   : > { %v1529_v54 = vadd.f32 %v1528_v52, %v1335_v48  ;;  %v1530_v55 = vpop.f32.mrb[38].mxu0  ;;  %1868 = vmatprep.subr.bf16.mxu0 %v1867_v49  ;;  %v1597_v49 = vld [vmem:[%s2594_s7] sm:$0xf] }
 0x36b   : > { %v1531_v56 = vadd.f32 %v1530_v55, %v1340_v53  ;;  %v1532_v57 = vpop.f32.mrb[39].mxu0  ;;  %1870 = vmatpush1.bf16.msra.mxu0 %v1869_v47  ;;  %v1581_v59 = vmax.f32 %v1527_v51, 0.0 }
 0x36c   : > { %v1533_v58 = vadd.f32 %v1532_v57, %v1340_v53  ;;  %v1582_v61 = vmax.f32 %v1529_v54, 0.0 }
 0x36d   : > { %v1583_v60 = vmax.f32 %v1531_v56, 0.0 }
 0x36e   : > { %v1584_v62 = vmax.f32 %v1533_v58, 0.0 }
 0x36f   : > { %v1873_v63 = vpack.c.bf16 %v1583_v60, %v1581_v59 }
 0x370   : > { %v1871_v1 = vpack.c.bf16 %v1584_v62, %v1582_v61  ;;  %v1536_v3 = vpop.f32.mrb[40].mxu0 }
 0x371   : > { %v1537_v4 = vadd.f32 %v1536_v3, %v1345_v0  ;;  %v1538_v5 = vpop.f32.mrb[41].mxu0 }
 0x372   : > { %v1539_v7 = vadd.f32 %v1538_v5, %v1345_v0  ;;  %v1540_v8 = vpop.f32.mrb[42].mxu0  ;;  %1872 = vmatprep.subr.bf16.mxu0 %v1871_v1 }
 0x373   : > { %v1541_v9 = vadd.f32 %v1540_v8, %v1350_v6  ;;  %v1542_v10 = vpop.f32.mrb[43].mxu0  ;;  %1874 = vmatpush1.bf16.msra.mxu0 %v1873_v63  ;;  %v1585_v12 = vmax.f32 %v1537_v4, 0.0 }
 0x374   : > { %v1543_v11 = vadd.f32 %v1542_v10, %v1350_v6  ;;  %v1586_v14 = vmax.f32 %v1539_v7, 0.0 }
 0x375   : > { %v1587_v13 = vmax.f32 %v1541_v9, 0.0 }
 0x376   : > { %v1588_v15 = vmax.f32 %v1543_v11, 0.0 }
 0x377   : > { %v1877_v16 = vpack.c.bf16 %v1587_v13, %v1585_v12 }
 0x378   : > { %v1875_v18 = vpack.c.bf16 %v1588_v15, %v1586_v14  ;;  %v1546_v19 = vpop.f32.mrb[44].mxu0 }
 0x379   : > { %v1547_v20 = vadd.f32 %v1546_v19, %v1355_v17  ;;  %v1548_v21 = vpop.f32.mrb[45].mxu0 }
 0x37a   : > { %v1549_v23 = vadd.f32 %v1548_v21, %v1355_v17  ;;  %v1550_v24 = vpop.f32.mrb[46].mxu0  ;;  %1876 = vmatprep.subr.bf16.mxu0 %v1875_v18 }
 0x37b   : > { %v1551_v25 = vadd.f32 %v1550_v24, %v1360_v22  ;;  %v1552_v26 = vpop.f32.mrb[47].mxu0  ;;  %1878 = vmatpush1.bf16.msra.mxu0 %v1877_v16  ;;  %v1589_v28 = vmax.f32 %v1547_v20, 0.0 }
 0x37c   : > { %v1553_v27 = vadd.f32 %v1552_v26, %v1360_v22  ;;  %v1590_v30 = vmax.f32 %v1549_v23, 0.0 }
 0x37d   : > { %v1591_v29 = vmax.f32 %v1551_v25, 0.0 }
 0x37e   : > { %v1592_v31 = vmax.f32 %v1553_v27, 0.0 }
 0x37f   : > { %v1881_v32 = vpack.c.bf16 %v1591_v29, %v1589_v28 }
 0x380   : > { %v1879_v34 = vpack.c.bf16 %v1592_v31, %v1590_v30  ;;  %v1556_v35 = vpop.f32.mrb[48].mxu0 }
 0x381   : > { %v1557_v36 = vadd.f32 %v1556_v35, %v1365_v33  ;;  %v1558_v2 = vpop.f32.mrb[49].mxu0 }
 0x382   : > { %v1559_v38 = vadd.f32 %v1558_v2, %v1365_v33  ;;  %v1560_v39 = vpop.f32.mrb[50].mxu0  ;;  %1880 = vmatprep.subr.bf16.mxu0 %v1879_v34 }
 0x383   : > { %v1561_v40 = vadd.f32 %v1560_v39, %v1370_v37  ;;  %v1562_v41 = vpop.f32.mrb[51].mxu0  ;;  %1882 = vmatpush1.bf16.msra.mxu0 %v1881_v32  ;;  %v1593_v43 = vmax.f32 %v1557_v36, 0.0 }
 0x384   : > { %v1563_v42 = vadd.f32 %v1562_v41, %v1370_v37  ;;  %v1594_v45 = vmax.f32 %v1559_v38, 0.0 }
 0x385   : > { %v1595_v44 = vmax.f32 %v1561_v40, 0.0 }
 0x386   : > { %v1596_v46 = vmax.f32 %v1563_v42, 0.0 }
 0x387   : > { %v1885_v47 = vpack.c.bf16 %v1595_v44, %v1593_v43 }
 0x388   : > { %v1883_v48 = vpack.c.bf16 %v1596_v46, %v1594_v45 }
 0x38a   : > { %1884 = vmatprep.subr.bf16.mxu0 %v1883_v48 }
 0x38b   : > { %1886 = vmatpush1.bf16.msra.mxu0 %v1885_v47 }
 0x38e   : > { %1669 = vmatmul.mubr.f32.vlgmr.msra.gmra.mrb[16].mxu0 %v1597_v49 }
 0x461   : > { %v1670_v51 = vpop.f32.mrb[16].mxu0 }
 0x462   : > { %v1671_v52 = vadd.f32 %v1670_v51, %v1602_v50  ;;  %v1672_v53 = vpop.f32.mrb[17].mxu0 }
 0x463   : > { %v1673_v54 = vadd.f32 %v1672_v53, %v1602_v50 }
 0x465   : > { %v1679_v55 = vcombine.low %v1671_v52, %v1673_v54 }
 0x467   : > { %1681 = vst [vmem:[%s350_s16] sm:$0xff] %v1679_v55 }
 0x468   : > { %2004 = shalt.err (!%p2001_p5)
}
 0x469   : > { %s2005_s27 = scalar_lea.hbm %s2540_s24, 128  ;;  %s2009_s20 = scalar_lea.hbm %s2596_s9, 256 }
 0x46a   : > { %p2006_p6 = scmp.ne.s32.totalorder %s2540_s24, %s2005_s27  ;;  %p2010_p10 = scmp.lt.u32.totalorder %s2540_s24, %s2596_s9 }
 0x46b   : > { %p2011_p11 = scmp.lt.u32.totalorder %s2009_s20, %s2005_s27  ;;  %p2013_p13 = scmp.lt.u32.totalorder %s2005_s27, %s2540_s24 }
 0x46c   : > { %p2007_p7 = pnand %p2006_p6, %p2165_p4 }
 0x46d   : > { %p2012_p12 = por %p2011_p11, %p2010_p10 }
 0x46e   : > { %p2008_p9 = pneg %p2007_p7 }
 0x46f   : > { %p2014_p0 = por %p2013_p13, %p2012_p12 }
 0x471   : > { %p2015_p1 = pnand %p2014_p0, %p2008_p9 }
 0x473   : > { %2018 = shalt.err (!%p2015_p1)
}
 0x474   : > { %1891 = dma.vmem_to_hbm [thread:$0]  (%p2165_p4), %s2542_s18, 128, %s2540_s24, %s1683_s25  }
 0x475 PF: > { %p1897_p2 = scmp.ge.s32.totalorder %s2069_s14, 2  ;;  %s1711_s26 = sand.u32 1, %s2049_s30  }
 0x476   : > { %s1712_s28 = scalar_lea.sflag [#allocation3], %s1711_s26 }
 0x477   : > { %p1894_p3 = pnand %p1897_p2, %p2172_p8 }
 0x479   : > { %2044 = dma.done.wait (!%p1894_p3), %s1712_s28, 128  }
 0x47a   : > { %2046 = vsyncadd (!%p1894_p3), %s1712_s28, 4294967168  ;;  %s22_s14 = sadd.s32 1, %s2069_s14   ;;  %s2599_s30 = smov %s2053_s10 }
 0x47b   : > { %p19_p5 = scmp.ge.s32.totalorder %s22_s14, 4   ;;  %s2600_s10 = smov %s2057_s11 }
 0x47c   : > { %s2601_s11 = smov %s2178_s22  ;;  %s2602_s12 = smov %s2065_s13 }
 0x47d   : > { %s2603_s13 = smov %s2605_s17  ;;  %21 = sbr.rel (!%p19_p5) target bundleno = 4 (0x4), region = 91 }
 0x484   :  { %1717 = vsyncpa [#allocation3], 1 }
 0x485   :  { %1719 = vsyncpa [#allocation3 + $0x1], 1 }

</bundles_post_ra>
